<compile_context>
chip_gen: v5e
topology: v5e:2x2
jax: 0.10.0
libtpu: 0.0.40
codegen_flags: <defaults>
</compile_context>

<pallas_src>
import functools
import math

import jax
import jax.numpy as jnp
from jax.experimental import pallas as pl
from jax.experimental.pallas import tpu as pltpu


def _round_up(n, m):
    return (n + m - 1) // m * m


def _mlp_kernel(x_ref, w1_ref, b1_ref, w2t_ref, b2t_ref, w3t_ref, b3_ref,
                o_ref, *, act_dtype):
    f32 = jnp.float32

    # Layer 1 (row-major, MXU): [tb, K] @ [K, 128] -> [tb, 128], f32 accumulate.
    a1 = jnp.dot(x_ref[...], w1_ref[...], preferred_element_type=f32) + b1_ref[...]

    # Flip batch rows (sublanes) onto lanes ONCE, at the (tb, 128) f32 stage —
    # a nicely (8,128)-aligned XLU transpose.  Everything downstream stays
    # lane-dense in the batch dim, so the final store is an unmasked (1, tb)
    # write instead of a masked, 128x write-amplified (tb, 1) column.
    a1t = a1.T                                              # [128, tb] f32
    h1t = jnp.tanh(a1t.astype(act_dtype))                   # EUP

    # Layer 2 (transposed, MXU): [64, 128] @ [128, tb] -> [64, tb], f32 acc.
    a2t = jnp.dot(w2t_ref[...], h1t.astype(w2t_ref.dtype),
                  preferred_element_type=f32) + b2t_ref[...]
    h2t = jnp.tanh(a2t.astype(act_dtype))

    # Layer 3 (64 -> 1): VPU multiply + sublane reduce -> [1, tb]; keeps the
    # tiny N=1 layer off the MXU and lands directly in the lane-dense layout.
    out = (jnp.sum(h2t.astype(f32) * w3t_ref[...], axis=0, keepdims=True)
           + b3_ref[...])
    o_ref[...] = out.astype(o_ref.dtype)


def state_value_network(x, params, *, tile_b=4096,
                        compute_dtype=jnp.bfloat16,
                        activation_dtype=jnp.float32):
    """Fused forward pass of StateValueNetwork.

    x: [B, obs] (any float dtype)
    params: dict with w1 [obs,128], b1 [1,128], w2 [128,64], b2 [1,64],
            w3 [64,1], b3 [1,1]   (weights stored [in, out])
    tile_b: batch tile size (rows per grid step), rounded to a multiple of 128.
    compute_dtype: dtype of the MXU matmul operands (bf16 default everywhere,
                   incl. v5e; accumulation is always f32).
    activation_dtype: dtype of the tanh math (f32 default; bf16 helps on
                      v6e/v7x where the EUP runs bf16 natively).
    returns: [B, 1] float32 state values
    """
    B, obs = x.shape
    cd = compute_dtype

    # MXU operands in compute_dtype; f32 accumulation is requested in-kernel.
    x_c = x if x.dtype == cd else x.astype(cd)
    w1 = params["w1"].astype(cd)                          # [obs, 128]
    b1 = params["b1"].reshape(1, 128).astype(jnp.float32)
    w2t = params["w2"].T.astype(cd)                       # [64, 128]
    b2t = params["b2"].reshape(64, 1).astype(jnp.float32)  # column for transposed layer 2
    w3t = params["w3"].reshape(64, 1).astype(jnp.float32)  # column for sublane reduce
    b3 = params["b3"].reshape(1, 1).astype(jnp.float32)

    # No obs->128 padding.  Only if obs isn't a multiple of 8, zero-pad the K
    # dim of x and w1 to the next multiple of 8 (no-op for obs = 16).
    if obs % 8:
        k = _round_up(obs, 8)
        x_c = jnp.pad(x_c, ((0, 0), (0, k - obs)))
        w1 = jnp.pad(w1, ((0, k - obs), (0, 0)))
        obs = k

    # Batch tile: multiple of 128 (lane-dense output slab + aligned transpose),
    # large enough to amortize per-grid-step overhead, capped so the grid has
    # >= 2 steps whenever B > 128 (keeps both v7x TensorCores busy).
    tb = min(_round_up(max(tile_b, 128), 128),
             _round_up(pl.cdiv(B, 2), 128))
    grid_b = pl.cdiv(B, tb)

    def resident(a):
        # Full-array block, same block every grid step -> stays in VMEM.
        return pl.BlockSpec(a.shape, lambda i: (0,) * a.ndim)

    out = pl.pallas_call(
        functools.partial(_mlp_kernel, act_dtype=activation_dtype),
        out_shape=jax.ShapeDtypeStruct((grid_b, tb), jnp.float32),
        grid=(grid_b,),
        in_specs=[
            pl.BlockSpec((tb, obs), lambda i: (i, 0)),   # x: tiled over batch
            resident(w1), resident(b1),
            resident(w2t), resident(b2t),
            resident(w3t), resident(b3),
        ],
        out_specs=pl.BlockSpec((1, tb), lambda i: (i, 0)),   # lane-dense slab
        compiler_params=pltpu.CompilerParams(
            dimension_semantics=("parallel",)),
    )(x_c, w1, b1, w2t, b2t, w3t, b3)

    # [grid_b, tb] lane-dense slab -> [B, 1]  (pad lanes from a partial last
    # tile are discarded here; rows are independent so they can't poison data).
    return out.reshape(grid_b * tb)[:B].reshape(B, 1)


def init_params(key, observation_space):
    """Deterministic init mirroring nn.Linear default (uniform +/- 1/sqrt(fan_in))."""
    dims = [(observation_space, 128), (128, 64), (64, 1)]
    params = {}
    keys = jax.random.split(key, 2 * len(dims))
    for i, (fan_in, fan_out) in enumerate(dims):
        bound = 1.0 / math.sqrt(fan_in)
        w = jax.random.uniform(
            keys[2 * i], (fan_in, fan_out), jnp.float32, -bound, bound)
        b = jax.random.uniform(
            keys[2 * i + 1], (1, fan_out), jnp.float32, -bound, bound)
        params[f"w{i + 1}"] = w
        params[f"b{i + 1}"] = b
    return params


def reference_forward(x, params):
    h1 = jnp.tanh(x @ params["w1"] + params["b1"])
    h2 = jnp.tanh(h1 @ params["w2"] + params["b2"])
    return h2 @ params["w3"] + params["b3"]


if __name__ == "__main__":
    OBS = 16  # observation_space

    key = jax.random.PRNGKey(0)
    k_params, k_x1, k_x2 = jax.random.split(key, 3)
    params = init_params(k_params, OBS)

    # Small batch, exact f32 compute path (single tile).
    x_small = jax.random.normal(k_x1, (8, OBS), jnp.float32)
    out_small = jax.block_until_ready(
        state_value_network(x_small, params, compute_dtype=jnp.float32))
    ref_small = reference_forward(x_small, params)
    assert out_small.shape == (8, 1), out_small.shape
    assert jnp.allclose(out_small, ref_small, atol=1e-5, rtol=1e-5)

    # Ragged multi-tile batch (300 rows, tile_b=128 -> 3 grid steps, last one
    # partial), still f32 compute for a tight check.
    x_big = jax.random.normal(k_x2, (300, OBS), jnp.float32)
    out_big = jax.block_until_ready(
        state_value_network(x_big, params, tile_b=128,
                            compute_dtype=jnp.float32))
    ref_big = reference_forward(x_big, params)
    assert out_big.shape == (300, 1), out_big.shape
    assert jnp.allclose(out_big, ref_big, atol=1e-4, rtol=1e-4)

    # Default path: bf16 MXU operands, f32 accumulation + f32 tanh.
    out_bf16 = jax.block_until_ready(state_value_network(x_big, params))
    assert out_bf16.shape == (300, 1), out_bf16.shape
    assert jnp.allclose(out_bf16, ref_big, atol=5e-2, rtol=5e-2)

    # bf16 activations (tanh on the EUP in bf16 -- the v6e/v7x option).
    out_act = jax.block_until_ready(
        state_value_network(x_big, params, activation_dtype=jnp.bfloat16))
    assert out_act.shape == (300, 1), out_act.shape
    assert jnp.allclose(out_act, ref_big, atol=1e-1, rtol=1e-1)

    print("KERNEL_OK")
</pallas_src>

<mosaic_0001>
module attributes {stable_mosaic.version = 11 : i64} {
  func.func @_mlp_kernel(%arg0: i32, %arg1: memref<128x16xf32, #tpu.memory_space<vmem>>, %arg2: memref<16x128xf32, #tpu.memory_space<vmem>>, %arg3: memref<1x128xf32, #tpu.memory_space<vmem>>, %arg4: memref<64x128xf32, #tpu.memory_space<vmem>>, %arg5: memref<64x1xf32, #tpu.memory_space<vmem>>, %arg6: memref<64x1xf32, #tpu.memory_space<vmem>>, %arg7: memref<1x1xf32, #tpu.memory_space<vmem>>, %arg8: memref<1x128xf32, #tpu.memory_space<vmem>>) attributes {dimension_semantics = [#tpu.dimension_semantics<parallel>], iteration_bounds = array<i64: 1>, scalar_prefetch = 0 : i64, scratch_operands = 0 : i64, tpu.core_type = #tpu.core_type<tc>, window_params = [{transform_indices = @transform_0, window_bounds = array<i64: 128, 16>}, {pipeline_mode = #tpu.pipeline_mode<synchronous>, transform_indices = @transform_1, window_bounds = array<i64: 16, 128>}, {pipeline_mode = #tpu.pipeline_mode<synchronous>, transform_indices = @transform_2, window_bounds = array<i64: 1, 128>}, {pipeline_mode = #tpu.pipeline_mode<synchronous>, transform_indices = @transform_3, window_bounds = array<i64: 64, 128>}, {pipeline_mode = #tpu.pipeline_mode<synchronous>, transform_indices = @transform_4, window_bounds = array<i64: 64, 1>}, {pipeline_mode = #tpu.pipeline_mode<synchronous>, transform_indices = @transform_5, window_bounds = array<i64: 64, 1>}, {pipeline_mode = #tpu.pipeline_mode<synchronous>, transform_indices = @transform_6, window_bounds = array<i64: 1, 1>}, {transform_indices = @transform_7, window_bounds = array<i64: 1, 128>}]} {
    %c0 = arith.constant 0 : index
    %c0_0 = arith.constant 0 : index
    %0 = vector.load %arg1[%c0, %c0_0] : memref<128x16xf32, #tpu.memory_space<vmem>>, vector<128x16xf32>
    %c0_1 = arith.constant 0 : index
    %c0_2 = arith.constant 0 : index
    %1 = vector.load %arg2[%c0_1, %c0_2] : memref<16x128xf32, #tpu.memory_space<vmem>>, vector<16x128xf32>
    %cst = arith.constant dense<0.000000e+00> : vector<128x128xf32>
    %2 = tpu.matmul %0, %1, %cst {dimension_numbers = #tpu.dot_dimension_numbers<[1], [0], [0], [1], [0, 0, 1, 1], [], []>} : vector<128x16xf32>, vector<16x128xf32>, vector<128x128xf32> -> vector<128x128xf32>
    %c0_3 = arith.constant 0 : index
    %c0_4 = arith.constant 0 : index
    %3 = vector.load %arg3[%c0_3, %c0_4] : memref<1x128xf32, #tpu.memory_space<vmem>>, vector<1x128xf32>
    %4 = vector.broadcast %3 : vector<1x128xf32> to vector<128x128xf32>
    %5 = arith.addf %2, %4 : vector<128x128xf32>
    %6 = tpu.transpose %5, [1, 0] : vector<128x128xf32> -> vector<128x128xf32>
    %7 = math.tanh %6 : vector<128x128xf32>
    %c0_5 = arith.constant 0 : index
    %c0_6 = arith.constant 0 : index
    %8 = vector.load %arg4[%c0_5, %c0_6] : memref<64x128xf32, #tpu.memory_space<vmem>>, vector<64x128xf32>
    %cst_7 = arith.constant dense<0.000000e+00> : vector<64x128xf32>
    %9 = tpu.matmul %8, %7, %cst_7 {dimension_numbers = #tpu.dot_dimension_numbers<[1], [0], [0], [1], [0, 0, 1, 1], [], []>} : vector<64x128xf32>, vector<128x128xf32>, vector<64x128xf32> -> vector<64x128xf32>
    %c0_8 = arith.constant 0 : index
    %c0_9 = arith.constant 0 : index
    %10 = vector.load %arg5[%c0_8, %c0_9] : memref<64x1xf32, #tpu.memory_space<vmem>>, vector<64x1xf32>
    %11 = vector.broadcast %10 : vector<64x1xf32> to vector<64x128xf32>
    %12 = arith.addf %9, %11 : vector<64x128xf32>
    %13 = math.tanh %12 : vector<64x128xf32>
    %c0_10 = arith.constant 0 : index
    %c0_11 = arith.constant 0 : index
    %14 = vector.load %arg6[%c0_10, %c0_11] : memref<64x1xf32, #tpu.memory_space<vmem>>, vector<64x1xf32>
    %15 = vector.broadcast %14 : vector<64x1xf32> to vector<64x128xf32>
    %16 = arith.mulf %13, %15 : vector<64x128xf32>
    %cst_12 = arith.constant dense<0.000000e+00> : vector<128xf32>
    %17 = vector.multi_reduction <add>, %16, %cst_12 [0] : vector<64x128xf32> to vector<128xf32>
    %18 = vector.shape_cast %17 : vector<128xf32> to vector<1x128xf32>
    %c0_13 = arith.constant 0 : index
    %c0_14 = arith.constant 0 : index
    %19 = vector.load %arg7[%c0_13, %c0_14] : memref<1x1xf32, #tpu.memory_space<vmem>>, vector<1x1xf32>
    %20 = vector.broadcast %19 : vector<1x1xf32> to vector<1x128xf32>
    %21 = arith.addf %18, %20 : vector<1x128xf32>
    %c0_15 = arith.constant 0 : index
    %c0_16 = arith.constant 0 : index
    %22 = vector.load %arg8[%c0_15, %c0_16] : memref<1x128xf32, #tpu.memory_space<vmem>>, vector<1x128xf32>
    tpu.vector_store %arg8[%c0_15, %c0_16], %21 {strides = array<i32>} : memref<1x128xf32, #tpu.memory_space<vmem>>, vector<1x128xf32>,
    return
  }
  func.func @transform_0(%arg0: i32) -> (i32, i32) {
    %c0_i32 = arith.constant 0 : i32
    %c0_i32_0 = arith.constant 0 : i32
    return %arg0, %c0_i32 : i32, i32
  }
  func.func @transform_1(%arg0: i32) -> (i32, i32) {
    %c0_i32 = arith.constant 0 : i32
    %c0_i32_0 = arith.constant 0 : i32
    %c0_i32_1 = arith.constant 0 : i32
    return %c0_i32, %c0_i32_0 : i32, i32
  }
  func.func @transform_2(%arg0: i32) -> (i32, i32) {
    %c0_i32 = arith.constant 0 : i32
    %c0_i32_0 = arith.constant 0 : i32
    %c0_i32_1 = arith.constant 0 : i32
    return %c0_i32, %c0_i32_0 : i32, i32
  }
  func.func @transform_3(%arg0: i32) -> (i32, i32) {
    %c0_i32 = arith.constant 0 : i32
    %c0_i32_0 = arith.constant 0 : i32
    %c0_i32_1 = arith.constant 0 : i32
    return %c0_i32, %c0_i32_0 : i32, i32
  }
  func.func @transform_4(%arg0: i32) -> (i32, i32) {
    %c0_i32 = arith.constant 0 : i32
    %c0_i32_0 = arith.constant 0 : i32
    %c0_i32_1 = arith.constant 0 : i32
    return %c0_i32, %c0_i32_0 : i32, i32
  }
  func.func @transform_5(%arg0: i32) -> (i32, i32) {
    %c0_i32 = arith.constant 0 : i32
    %c0_i32_0 = arith.constant 0 : i32
    %c0_i32_1 = arith.constant 0 : i32
    return %c0_i32, %c0_i32_0 : i32, i32
  }
  func.func @transform_6(%arg0: i32) -> (i32, i32) {
    %c0_i32 = arith.constant 0 : i32
    %c0_i32_0 = arith.constant 0 : i32
    %c0_i32_1 = arith.constant 0 : i32
    return %c0_i32, %c0_i32_0 : i32, i32
  }
  func.func @transform_7(%arg0: i32) -> (i32, i32) {
    %c0_i32 = arith.constant 0 : i32
    %c0_i32_0 = arith.constant 0 : i32
    return %arg0, %c0_i32 : i32, i32
  }
}

</mosaic_0001>

<bundles_post_ra>
// kernel: tpu_custom_call.1
= control target key start
LH: loop header
LB: loop body
LE: loop exit
PB: predicated region body
PF: predicated region fallthrough
CT: control target
= control target key end

     0   :  { %s743_s0 = inlined_call_operand.vmem [shape: f32[8,16], index: 0, kind: input, shape index: {}]   ;;  %s744_s1 = inlined_call_operand.vmem [shape: f32[16,128], index: 1, kind: input, shape index: {}]   ;;  %s745_s2 = inlined_call_operand.vmem [shape: f32[1,128], index: 2, kind: input, shape index: {}]   ;;  %s746_s3 = inlined_call_operand.vmem [shape: f32[64,128], index: 3, kind: input, shape index: {}]   ;;  %s747_s4 = inlined_call_operand.vmem [shape: f32[64,1], index: 4, kind: input, shape index: {}]   ;;  %s748_s5 = inlined_call_operand.vmem [shape: f32[64,1], index: 5, kind: input, shape index: {}]   ;;  %s749_s6 = inlined_call_operand.<no memory space> [shape: f32[1,1], index: 6, kind: input, shape index: {}]   ;;  %s750_s7 = inlined_call_operand.hbm [shape: f32[1,128], index: 7, kind: output, shape index: {}]  }
   0x1   :  { %v12_v0 = vstv %s749_s6 }
   0x2   :  { %13 = vst [vmem:[#allocation2] sm:$0x1] %v12_v0 }
   0x3   :  { %v46_v1 = vld [vmem:[%s744_s1 + $0x8] sm:$0xff]  ;;  %v45_v2 = vld [vmem:[%s744_s1] sm:$0xff]  ;;  %vm51_vm0 = vcmask 130048  }
   0x4   :  { %114 = vmatpush.msra.mxu0 %v46_v1  ;;  %v29_v3 = vld [vmem:[%s743_s0] sm:$0xff]  ;;  %428 = vmatpush.msra.mxu2 %v46_v1 }
   0x5   :  { %14 = vsyncpa [#allocation4], 0  ;;  %v30_v4 = vld [vmem:[%s743_s0 + $0x8] sm:$0xff]  ;;  %v31_v5 = vld [vmem:[%s743_s0 + $0x10] sm:$0xff]  ;;  %v526_v61 = vmov 0   ;;  %s403_s10 = sshll.u32 %s750_s7, 4  ;;  %s404_s10 = int_to_ptr.hbm [resolvable:$true] %s403_s10 }
   0x6   :  { %115 = vmatpush.msra.mxu0 %v45_v2  ;;  %429 = vmatpush.msra.mxu2 %v45_v2  ;;  %v36_v6 = vld [vmem:[%s743_s0 + $0x38] sm:$0xff]  ;;  %v37_v8 = vld [vmem:[%s743_s0 + $0x40] sm:$0xff]  ;;  %v38_v10 = vld [vmem:[%s743_s0 + $0x48] sm:$0xff] }
   0x7   :  { %412 = vmatmul.msk.f32.vlgmr.msra.gmra.mxu0 %vm51_vm0, %v29_v3  ;;  %419 = vmatmul.msk.f32.vlgmr.msra.gmra.mxu2 %vm51_vm0, %v36_v6  ;;  %v32_v7 = vld [vmem:[%s743_s0 + $0x18] sm:$0xff]  ;;  %v33_v9 = vld [vmem:[%s743_s0 + $0x20] sm:$0xff]  ;;  %v34_v11 = vld [vmem:[%s743_s0 + $0x28] sm:$0xff] }
   0x8   :  { %v39_v12 = vld [vmem:[%s743_s0 + $0x50] sm:$0xff]  ;;  %v40_v14 = vld [vmem:[%s743_s0 + $0x58] sm:$0xff]  ;;  %v41_v15 = vld [vmem:[%s743_s0 + $0x60] sm:$0xff]  ;;  %448 = vset.pattern.permute.xlu1 %v526_v61  ;;  %449 = vset.pattern.permute.xlu2 %v526_v61 }
   0x9   :  { %v35_v13 = vld [vmem:[%s743_s0 + $0x30] sm:$0xff]  ;;  %v42_v16 = vld [vmem:[%s743_s0 + $0x68] sm:$0xff]  ;;  %v44_v18 = vld [vmem:[%s743_s0 + $0x78] sm:$0xff] }
   0xa   :  { %v43_v17 = vld [vmem:[%s743_s0 + $0x70] sm:$0xff]  ;;  %v451_v19 = vld [vmem:[%s745_s2] ss:$0 sm:$0xff]  ;;  %v222_v63 = vld [vmem:[%s747_s4 + $0x8] sm:$0xff] }
   0xb   :  { %v221_v60 = vld [vmem:[%s747_s4] sm:$0xff] }
   0xc   :  { %231 = vperm.xlu1 %448, %v221_v60   ;;  %v225_v1 = vld [vmem:[%s747_s4 + $0x20] sm:$0xff] }
   0xd   :  { %v318_v3 = vld [vmem:[%s748_s5] sm:$0xff] }
   0xf   :  { %413 = vmatmul.msk.f32.gmra.mxu0 %vm51_vm0, %v30_v4  ;;  %420 = vmatmul.msk.f32.gmra.mxu2 %vm51_vm0, %v37_v8  ;;  %v228_v8 = vld [vmem:[%s747_s4 + $0x38] sm:$0xff] }
  0x14   :  { %236 = vperm.xlu1 %448, %v222_v63  }
  0x17   :  { %414 = vmatmul.msk.f32.gmra.mxu0 %vm51_vm0, %v31_v5  ;;  %421 = vmatmul.msk.f32.gmra.mxu2 %vm51_vm0, %v38_v10  ;;  %v227_v5 = vld [vmem:[%s747_s4 + $0x30] sm:$0xff]  ;;  %v224_v10 = vld [vmem:[%s747_s4 + $0x18] sm:$0xff] }
  0x1c   :  { %251 = vperm.xlu1 %448, %v225_v1  }
  0x1f   :  { %415 = vmatmul.msk.f32.gmra.mxu0 %vm51_vm0, %v32_v7  ;;  %422 = vmatmul.msk.f32.gmra.mxu2 %vm51_vm0, %v39_v12  ;;  %v223_v7 = vld [vmem:[%s747_s4 + $0x10] sm:$0xff] }
  0x20   :  { %241 = vperm.xlu2 %449, %v223_v7  }
  0x24   :  { %328 = vperm.xlu1 %448, %v318_v3  }
  0x27   :  { %416 = vmatmul.msk.f32.gmra.mxu0 %vm51_vm0, %v33_v9  ;;  %423 = vmatmul.msk.f32.gmra.mxu2 %vm51_vm0, %v40_v14  ;;  %v324_v14 = vld [vmem:[%s748_s5 + $0x30] sm:$0xff] }
  0x28   :  { %246 = vperm.xlu2 %449, %v224_v10  }
  0x2c   :  { %261 = vperm.xlu1 %448, %v227_v5  }
  0x2f   :  { %417 = vmatmul.msk.f32.gmra.mxu0 %vm51_vm0, %v34_v11  ;;  %424 = vmatmul.msk.f32.gmra.mxu2 %vm51_vm0, %v41_v15  ;;  %v322_v11 = vld [vmem:[%s748_s5 + $0x20] sm:$0xff] }
  0x34   :  { %266 = vperm.xlu1 %448, %v228_v8  }
  0x37   :  { %418 = vmatmul.msk.f32.gmra.mxu0 %vm51_vm0, %v35_v13  ;;  %425 = vmatmul.msk.f32.gmra.mxu2 %vm51_vm0, %v42_v16  ;;  %v226_v13 = vld [vmem:[%s747_s4 + $0x28] sm:$0xff] }
  0x38   :  { %256 = vperm.xlu2 %449, %v226_v13   ;;  %v319_v16 = vld [vmem:[%s748_s5 + $0x8] sm:$0xff] }
  0x3c   :  { %348 = vperm.xlu1 %448, %v322_v11  }
  0x3f   :  { %426 = vmatmul.msk.f32.gmra.mxu2 %vm51_vm0, %v43_v17  ;;  %v387_v17 = vld [vmem:[#allocation2] sm:$0x1] }
  0x40   :  { %333 = vperm.xlu2 %449, %v319_v16  }
  0x44   :  { %358 = vperm.xlu1 %448, %v324_v14  }
  0x47   :  { %427 = vmatmul.msk.f32.gmra.mxu2 %vm51_vm0, %v44_v18 }
  0x4c   :  { %390 = vperm.xlu1 %448, %v387_v17  }
  0x84   :  { %v117_v20 = vpop.f32.mrf.mxu0 }
  0x85   :  { %v118_v21 = vadd.f32 %v451_v19, %v117_v20 }
  0x87   :  { %165 = vxpose.xlu0.b32.start [1/16] %v118_v21, 128 }
  0x8a   :  { %v138_v30 = vpop.f32.mrf.mxu2 }
  0x8b   :  { %v139_v36 = vadd.f32 %v451_v19, %v138_v30 }
  0x8c   :  { %v120_v22 = vpop.f32.mrf.mxu0 }
  0x8d   :  { %v121_v23 = vadd.f32 %v451_v19, %v120_v22 }
  0x8f   :  { %166 = vxpose.xlu0.b32.cont [2/16] %v121_v23, 128 }
  0x92   :  { %v141_v33 = vpop.f32.mrf.mxu2 }
  0x93   :  { %v142_v38 = vadd.f32 %v451_v19, %v141_v33 }
  0x94   :  { %v123_v24 = vpop.f32.mrf.mxu0 }
  0x95   :  { %v124_v25 = vadd.f32 %v451_v19, %v123_v24  ;;  %v321_v24 = vld [vmem:[%s748_s5 + $0x18] sm:$0xff] }
  0x97   :  { %167 = vxpose.xlu0.b32.cont [3/16] %v124_v25, 128 }
  0x9a   :  { %v144_v37 = vpop.f32.mrf.mxu2 }
  0x9b   :  { %v145_v40 = vadd.f32 %v451_v19, %v144_v37  ;;  %v213_v37 = vld [vmem:[%s746_s3] sm:$0xff] }
  0x9c   :  { %v126_v26 = vpop.f32.mrf.mxu0 }
  0x9d   :  { %v127_v27 = vadd.f32 %v451_v19, %v126_v26 }
  0x9f   :  { %168 = vxpose.xlu0.b32.cont [4/16] %v127_v27, 128 }
  0xa2   :  { %v147_v39 = vpop.f32.mrf.mxu2 }
  0xa3   :  { %v148_v42 = vadd.f32 %v451_v19, %v147_v39 }
  0xa4   :  { %v129_v28 = vpop.f32.mrf.mxu0 }
  0xa5   :  { %v130_v29 = vadd.f32 %v451_v19, %v129_v28 }
  0xa7   :  { %169 = vxpose.xlu0.b32.cont [5/16] %v130_v29, 128  ;;  %v323_v29 = vld [vmem:[%s748_s5 + $0x28] sm:$0xff] }
  0xaa   :  { %v150_v41 = vpop.f32.mrf.mxu2 }
  0xab   :  { %v151_v44 = vadd.f32 %v451_v19, %v150_v41  ;;  %v219_v41 = vld [vmem:[%s746_s3 + $0x30] sm:$0xff] }
  0xac   :  { %v132_v31 = vpop.f32.mrf.mxu0 }
  0xad   :  { %v133_v32 = vadd.f32 %v451_v19, %v132_v31 }
  0xaf   :  { %170 = vxpose.xlu0.b32.cont [6/16] %v133_v32, 128 }
  0xb2   :  { %v153_v43 = vpop.f32.mrf.mxu2 }
  0xb3   :  { %v154_v45 = vadd.f32 %v451_v19, %v153_v43  ;;  %v220_v43 = vld [vmem:[%s746_s3 + $0x38] sm:$0xff] }
  0xb4   :  { %v135_v34 = vpop.f32.mrf.mxu0 }
  0xb5   :  { %v136_v35 = vadd.f32 %v451_v19, %v135_v34  ;;  %v325_v34 = vld [vmem:[%s748_s5 + $0x38] sm:$0xff] }
  0xb7   :  { %171 = vxpose.xlu0.b32.cont [7/16] %v136_v35, 128 }
  0xba   :  { %v156_v46 = vpop.f32.mrf.mxu2 }
  0xbb   :  { %v157_v47 = vadd.f32 %v451_v19, %v156_v46  ;;  %v232_v46 = vpop.permute.xlu1 %231 }
  0xbf   :  { %172 = vxpose.xlu0.b32.cont [8/16] %v139_v36, 128 }
  0xc2   :  { %v159_v48 = vpop.f32.mrf.mxu2 }
  0xc3   :  { %v160_v49 = vadd.f32 %v451_v19, %v159_v48  ;;  %v237_v48 = vpop.permute.xlu1 %236 }
  0xc7   :  { %173 = vxpose.xlu0.b32.cont [9/16] %v142_v38, 128  ;;  %v218_v38 = vld [vmem:[%s746_s3 + $0x28] sm:$0xff] }
  0xca   :  { %v162_v50 = vpop.f32.mrf.mxu2 }
  0xcb   :  { %v163_v51 = vadd.f32 %v451_v19, %v162_v50  ;;  %v320_v19 = vld [vmem:[%s748_s5 + $0x10] sm:$0xff]  ;;  %v252_v50 = vpop.permute.xlu1 %251 }
  0xcc   :  { %338 = vperm.xlu2 %449, %v320_v19  }
  0xcf   :  { %174 = vxpose.xlu0.b32.cont [10/16] %v145_v40, 128  ;;  %v214_v40 = vld [vmem:[%s746_s3 + $0x8] sm:$0xff] }
  0xd4   :  { %343 = vperm.xlu2 %449, %v321_v24  }
  0xd7   :  { %175 = vxpose.xlu0.b32.cont [11/16] %v148_v42, 128  ;;  %v215_v42 = vld [vmem:[%s746_s3 + $0x10] sm:$0xff] }
  0xdc   :  { %353 = vperm.xlu2 %449, %v323_v29  }
  0xdf   :  { %176 = vxpose.xlu0.b32.cont [12/16] %v151_v44, 128  ;;  %v216_v44 = vld [vmem:[%s746_s3 + $0x18] sm:$0xff] }
  0xe4   :  { %363 = vperm.xlu2 %449, %v325_v34  }
  0xe7   :  { %177 = vxpose.xlu0.b32.cont [13/16] %v154_v45, 128  ;;  %v217_v45 = vld [vmem:[%s746_s3 + $0x20] sm:$0xff]  ;;  %s527_s3 = smov [#allocation3]  }
  0xe8   :  { %s401_s8 = sshll.u32 %s527_s3, 4  ;;  %s402_s8 = int_to_ptr.vmem [resolvable:$true] %s401_s8 }
  0xef   :  { %178 = vxpose.xlu0.b32.cont [14/16] %v157_v47, 128  ;;  %v242_v47 = vpop.permute.xlu2 %241 }
  0xf7   :  { %179 = vxpose.xlu0.b32.cont [15/16] %v160_v49, 128  ;;  %v247_v49 = vpop.permute.xlu2 %246 }
  0xff   :  { %180 = vxpose.xlu0.b32.end [16/16] %v163_v51, 128  ;;  %v257_v51 = vpop.permute.xlu2 %256 }
 0x12b   :  { %v644_v52 = vpop.trf.xlu0 }
 0x133   :  { %v646_v53 = vpop.trf.xlu0 }
 0x13b   :  { %v648_v54 = vpop.trf.xlu0 }
 0x143   :  { %v650_v55 = vpop.trf.xlu0 }
 0x14b   :  { %v652_v56 = vpop.trf.xlu0 }
 0x153   :  { %v654_v57 = vpop.trf.xlu0 }
 0x15b   :  { %v656_v58 = vpop.trf.xlu0 }
 0x163   :  { %v658_v59 = vpop.trf.xlu0 }
 0x166   :  { %450 = vset.pattern.permute.xlu0 %v526_v61 }
 0x16b   :  { %v189_v62 = vpop.trf.xlu0 }
 0x173   :  { %v190_v0 = vpop.trf.xlu0 }
 0x17b   :  { %v191_v2 = vpop.trf.xlu0 }
 0x183   :  { %v192_v4 = vpop.trf.xlu0 }
 0x18b   :  { %v193_v6 = vpop.trf.xlu0 }
 0x193   :  { %v194_v9 = vpop.trf.xlu0 }
 0x19b   :  { %v195_v12 = vpop.trf.xlu0 }
 0x1a3   :  { %v196_v15 = vpop.trf.xlu0 }
 0x1a4   :  { %452 = vtanh.f32 %v196_v15 }
 0x1a5   :  { %454 = vtanh.f32 %v195_v12 }
 0x1a6   :  { %456 = vtanh.f32 %v194_v9 }
 0x1a7   :  { %458 = vtanh.f32 %v193_v6 }
 0x1a8   :  { %460 = vtanh.f32 %v192_v4 }
 0x1a9   :  { %462 = vtanh.f32 %v191_v2 }
 0x1aa   :  { %v453_v18 = vpop.eup %452  ;;  %464 = vtanh.f32 %v190_v0 }
 0x1ab   :  { %269 = vmatpush.msra.mxu1 %v453_v18  ;;  %430 = vmatpush.msra.mxu3 %v453_v18  ;;  %v455_v20 = vpop.eup %454  ;;  %466 = vtanh.f32 %v189_v62 }
 0x1ac   :  { %v457_v21 = vpop.eup %456  ;;  %468 = vtanh.f32 %v658_v59 }
 0x1ad   :  { %270 = vmatpush.msra.mxu1 %v455_v20  ;;  %431 = vmatpush.msra.mxu3 %v455_v20  ;;  %v459_v22 = vpop.eup %458  ;;  %470 = vtanh.f32 %v656_v58 }
 0x1ae   :  { %v461_v23 = vpop.eup %460  ;;  %472 = vtanh.f32 %v654_v57 }
 0x1af   :  { %271 = vmatpush.msra.mxu1 %v457_v21  ;;  %432 = vmatpush.msra.mxu3 %v457_v21  ;;  %v463_v25 = vpop.eup %462  ;;  %474 = vtanh.f32 %v652_v56 }
 0x1b0   :  { %v465_v26 = vpop.eup %464  ;;  %476 = vtanh.f32 %v650_v55 }
 0x1b1   :  { %272 = vmatpush.msra.mxu1 %v459_v22  ;;  %433 = vmatpush.msra.mxu3 %v459_v22  ;;  %v467_v27 = vpop.eup %466  ;;  %478 = vtanh.f32 %v648_v54  ;;  %v334_v54 = vpop.permute.xlu2 %333 }
 0x1b2   :  { %v469_v28 = vpop.eup %468  ;;  %480 = vtanh.f32 %v646_v53  ;;  %v329_v53 = vpop.permute.xlu1 %328 }
 0x1b3   :  { %273 = vmatpush.msra.mxu1 %v461_v23  ;;  %434 = vmatpush.msra.mxu3 %v461_v23  ;;  %v471_v30 = vpop.eup %470  ;;  %482 = vtanh.f32 %v644_v52 }
 0x1b4   :  { %v473_v31 = vpop.eup %472 }
 0x1b5   :  { %274 = vmatpush.msra.mxu1 %v463_v25  ;;  %435 = vmatpush.msra.mxu3 %v463_v25  ;;  %v475_v32 = vpop.eup %474 }
 0x1b6   :  { %v477_v33 = vpop.eup %476 }
 0x1b7   :  { %275 = vmatpush.msra.mxu1 %v465_v26  ;;  %436 = vmatpush.msra.mxu3 %v465_v26  ;;  %v479_v35 = vpop.eup %478 }
 0x1b8   :  { %v481_v36 = vpop.eup %480 }
 0x1b9   :  { %276 = vmatpush.msra.mxu1 %v467_v27  ;;  %437 = vmatpush.msra.mxu3 %v467_v27  ;;  %v483_v39 = vpop.eup %482  ;;  %v339_v59 = vpop.permute.xlu2 %338 }
 0x1ba   :  { %v262_v57 = vpop.permute.xlu1 %261 }
 0x1bb   :  { %277 = vmatpush.msra.mxu1 %v469_v28  ;;  %438 = vmatpush.msra.mxu3 %v469_v28 }
 0x1bd   :  { %278 = vmatpush.msra.mxu1 %v471_v30  ;;  %439 = vmatpush.msra.mxu3 %v471_v30 }
 0x1bf   :  { %279 = vmatpush.msra.mxu1 %v473_v31  ;;  %440 = vmatpush.msra.mxu3 %v473_v31 }
 0x1c1   :  { %280 = vmatpush.msra.mxu1 %v475_v32  ;;  %441 = vmatpush.msra.mxu3 %v475_v32  ;;  %v344_v3 = vpop.permute.xlu2 %343 }
 0x1c2   :  { %v267_v1 = vpop.permute.xlu1 %266 }
 0x1c3   :  { %281 = vmatpush.msra.mxu1 %v477_v33  ;;  %442 = vmatpush.msra.mxu3 %v477_v33 }
 0x1c5   :  { %282 = vmatpush.msra.mxu1 %v479_v35  ;;  %443 = vmatpush.msra.mxu3 %v479_v35 }
 0x1c7   :  { %283 = vmatpush.msra.mxu1 %v481_v36  ;;  %444 = vmatpush.msra.mxu3 %v481_v36 }
 0x1c9   :  { %284 = vmatpush.msra.mxu1 %v483_v39  ;;  %445 = vmatpush.msra.mxu3 %v483_v39  ;;  %v354_v18 = vpop.permute.xlu2 %353 }
 0x1ca   :  { %285 = vmatmul.f32.vlgmr.msra.gmra.mxu1 %v213_v37  ;;  %300 = vmatmul.f32.vlgmr.msra.gmra.mxu3 %v218_v38  ;;  %v349_v14 = vpop.permute.xlu1 %348 }
 0x1d1   :  { %v364_v33 = vpop.permute.xlu2 %363 }
 0x1d2   :  { %288 = vmatmul.f32.gmra.mxu1 %v214_v40  ;;  %303 = vmatmul.f32.gmra.mxu3 %v219_v41  ;;  %v359_v30 = vpop.permute.xlu1 %358 }
 0x1da   :  { %291 = vmatmul.f32.gmra.mxu1 %v215_v42  ;;  %306 = vmatmul.f32.gmra.mxu3 %v220_v43  ;;  %v391_v41 = vpop.permute.xlu1 %390 }
 0x1db   :  { %v393_v43 = vperm.slane %v391_v41, 0 }
 0x1e2   :  { %294 = vmatmul.f32.gmra.mxu1 %v216_v44 }
 0x1ea   :  { %297 = vmatmul.f32.gmra.mxu1 %v217_v45 }
 0x247   :  { %v286_v52 = vpop.f32.mrf.mxu1 }
 0x248   :  { %v287_v61 = vadd.f32 %v286_v52, %v232_v46 }
 0x24d   :  { %v301_v56 = vpop.f32.mrf.mxu3 }
 0x24e   :  { %v302_v4 = vadd.f32 %v301_v56, %v257_v51 }
 0x24f   :  { %v289_v55 = vpop.f32.mrf.mxu1 }
 0x250   :  { %v290_v60 = vadd.f32 %v289_v55, %v237_v48 }
 0x252   :  { %484 = vtanh.f32 %v290_v60 }
 0x253   :  { %486 = vtanh.f32 %v287_v61 }
 0x255   :  { %v304_v62 = vpop.f32.mrf.mxu3 }
 0x256   :  { %v305_v10 = vadd.f32 %v304_v62, %v262_v57 }
 0x257   :  { %v292_v58 = vpop.f32.mrf.mxu1 }
 0x258   :  { %v293_v63 = vadd.f32 %v292_v58, %v242_v47  ;;  %v485_v5 = vpop.eup %484 }
 0x259   :  { %v487_v6 = vpop.eup %486  ;;  %v367_v12 = vmul.f32 %v485_v5, %v334_v54 }
 0x25a   :  { %488 = vtanh.f32 %v293_v63  ;;  %v366_v16 = vmul.f32 %v487_v6, %v329_v53 }
 0x25c   :  { %v374_v19 = vadd.f32 %v367_v12, %v366_v16 }
 0x25d   :  { %v307_v7 = vpop.f32.mrf.mxu3 }
 0x25e   :  { %v308_v15 = vadd.f32 %v307_v7, %v267_v1 }
 0x25f   :  { %v295_v0 = vpop.f32.mrf.mxu1 }
 0x260   :  { %v296_v2 = vadd.f32 %v295_v0, %v247_v49  ;;  %v489_v9 = vpop.eup %488 }
 0x261   :  { %v368_v17 = vmul.f32 %v489_v9, %v339_v59 }
 0x262   :  { %490 = vtanh.f32 %v296_v2 }
 0x263   :  { %492 = vtanh.f32 %v302_v4  ;;  %v375_v22 = vadd.f32 %v374_v19, %v368_v17 }
 0x267   :  { %v298_v8 = vpop.f32.mrf.mxu1 }
 0x268   :  { %v299_v11 = vadd.f32 %v298_v8, %v252_v50  ;;  %v491_v13 = vpop.eup %490 }
 0x269   :  { %v369_v20 = vmul.f32 %v491_v13, %v344_v3  ;;  %v493_v21 = vpop.eup %492 }
 0x26a   :  { %494 = vtanh.f32 %v299_v11  ;;  %v371_v27 = vmul.f32 %v493_v21, %v354_v18 }
 0x26b   :  { %496 = vtanh.f32 %v305_v10  ;;  %v376_v24 = vadd.f32 %v375_v22, %v369_v20 }
 0x26c   :  { %498 = vtanh.f32 %v308_v15 }
 0x270   :  { %v495_v23 = vpop.eup %494 }
 0x271   :  { %v370_v25 = vmul.f32 %v495_v23, %v349_v14  ;;  %v497_v26 = vpop.eup %496 }
 0x272   :  { %v499_v29 = vpop.eup %498  ;;  %v372_v31 = vmul.f32 %v497_v26, %v359_v30 }
 0x273   :  { %v377_v28 = vadd.f32 %v376_v24, %v370_v25  ;;  %v373_v34 = vmul.f32 %v499_v29, %v364_v33 }
 0x275   :  { %v378_v32 = vadd.f32 %v377_v28, %v371_v27 }
 0x277   :  { %v379_v35 = vadd.f32 %v378_v32, %v372_v31 }
 0x279   :  { %v380_v36 = vadd.f32 %v379_v35, %v373_v34 }
 0x27b   :  { %v381_v37 = vrot.slane %v380_v36, 4 }
 0x27d   :  { %v382_v38 = vadd.f32 %v381_v37, %v380_v36 }
 0x27f   :  { %v383_v39 = vrot.slane %v382_v38, 2 }
 0x281   :  { %v384_v40 = vadd.f32 %v383_v39, %v382_v38 }
 0x283   :  { %v385_v42 = vrot.slane %v384_v40, 1 }
 0x285   :  { %v386_v44 = vadd.f32 %v385_v42, %v384_v40 }
 0x287   :  { %v394_v45 = vadd.f32 %v393_v43, %v386_v44 }
 0x289   :  { %395 = vst [vmem:[#allocation3] sm:$0x1] %v394_v45 }
 0x28a   :  { %406 = dma.vmem_to_hbm [thread:$0]  %s402_s8, 16, %s404_s10, [#allocation4]  }
 0x28b   :  { %524 = dma.done.wait [#allocation4], 16  }
 0x28c   :  { %525 = vsyncadd [#allocation4], 4294967280 }
 0x28d   :  { %411 = vsyncpa [#allocation4], 1 }

</bundles_post_ra>
